<compile_context>
chip_gen: v7x
topology: tpu7x:2x2x1
jax: 0.10.0
libtpu: 0.0.40
codegen_flags: <defaults>
</compile_context>

<pallas_src>
import functools

import jax
import jax.numpy as jnp
from jax.experimental import pallas as pl
from jax.experimental.pallas import tpu as pltpu


def _round_up(x, m):
    return (x + m - 1) // m * m


def _pick_vocab_tile(v, max_tv=2048):
    """Largest multiple of 128 <= max_tv that divides V; else the full V."""
    if v <= max_tv or v % 128 != 0:
        return v
    for cand in range(max_tv, 127, -128):
        if v % cand == 0:
            return cand
    return v


def _skipgram_kernel(nv, tv, idx_ref, emb_ref, w_ref, b_ref, out_ref, emb_scratch):
    """Grid step (i, vj): gather rows (vj==0), matmul one vocab tile, finalize."""
    vj = pl.program_id(1)

    # --- One-hot MXU gather of the TB embedding rows (once per row tile). ---
    @pl.when(vj == 0)
    def _():
        ids = idx_ref[...]                                   # (tb, 1) int32
        tb = ids.shape[0]
        vocab = emb_ref.shape[0]
        iota = jax.lax.broadcasted_iota(jnp.int32, (tb, vocab), 1)
        onehot = (ids == iota).astype(emb_ref.dtype)         # exact 0/1 values
        emb_scratch[...] = jnp.dot(
            onehot, emb_ref[...],
            preferred_element_type=jnp.float32).astype(emb_scratch.dtype)

    # --- (tb, Ep) @ (Ep, tv) + bias tile -> store into resident out block. ---
    logits = jnp.dot(emb_scratch[...], w_ref[...],
                     preferred_element_type=jnp.float32)
    logits = logits + b_ref[...]                              # (tb, tv) f32
    col = pl.multiple_of(vj * tv, tv)
    out_ref[:, pl.ds(col, tv)] = logits.astype(out_ref.dtype)

    # --- Last vocab tile: fused, numerically stable log_softmax in place. ---
    @pl.when(vj == nv - 1)
    def _():
        full = out_ref[...].astype(jnp.float32)               # (tb, V)
        m = jnp.max(full, axis=-1, keepdims=True)
        lse = m + jnp.log(jnp.sum(jnp.exp(full - m), axis=-1, keepdims=True))
        out_ref[...] = (full - lse).astype(out_ref.dtype)


def skipgram_forward(x_ids, emb_tbl, w, b, *, block_rows=None,
                     compute_dtype=jnp.float32, vocab_tile=None):
    B = int(x_ids.shape[0])
    V, E = emb_tbl.shape
    assert w.shape == (E, V), "pass nn.Linear.weight transposed: (E, V)"
    assert b.shape == (V,)

    # Lane-pad the contraction axis E -> Ep (multiple of 128). Zero columns of
    # the table / zero rows of W contribute nothing numerically.
    Ep = max(_round_up(E, 128), 128)
    if Ep != E:
        emb_tbl = jnp.pad(emb_tbl, ((0, 0), (0, Ep - E)))
        w = jnp.pad(w, ((0, Ep - E), (0, 0)))

    # Cast both MXU operands host-side (bf16 path halves resident bytes).
    emb_tbl = emb_tbl.astype(compute_dtype)
    w = w.astype(compute_dtype)
    b2d = b.reshape(1, V).astype(jnp.float32)

    # Row tile: multiple of 8, >= 2 tiles whenever B permits (v7x megacore),
    # capped at 256 rows (fills the v6e/v7x MXU M dimension).
    if block_rows is None:
        block_rows = 8 if B <= 8 else _round_up((B + 1) // 2, 8)
    tb = min(_round_up(max(block_rows, 8), 8), 256)
    b_pad = _round_up(B, tb)
    nb = b_pad // tb

    # Vocab tile for W / bias / the per-step logits store.
    tv = vocab_tile if vocab_tile is not None else _pick_vocab_tile(V)
    assert V % tv == 0, "vocab_tile must divide the vocab size"
    nv = V // tv

    ids = x_ids.astype(jnp.int32).reshape(-1, 1)
    if b_pad != B:
        # Padded tail rows gather token 0; their outputs are sliced off below.
        ids = jnp.pad(ids, ((0, b_pad - B), (0, 0)))

    esize = jnp.dtype(compute_dtype).itemsize
    vmem_bytes = (
        2 * V * Ep * esize        # resident embedding table (pipeline buffers)
        + 2 * Ep * tv * esize     # W tile double-buffer
        + 2 * tv * 4              # bias tile double-buffer
        + 2 * tb * 4              # ids tile double-buffer
        + 2 * tb * V * 4          # output block buffers
        + tb * Ep * esize         # gathered-embeddings scratch
        + tb * V * 4              # one-hot / logits temporaries
        + (8 << 20))              # headroom
    vmem_bytes = int(min(vmem_bytes, 100 << 20))

    grid_spec = pltpu.PrefetchScalarGridSpec(
        num_scalar_prefetch=0,
        grid=(nb, nv),
        in_specs=[
            pl.BlockSpec((tb, 1), lambda i, vj: (i, 0)),     # token ids
            pl.BlockSpec((V, Ep), lambda i, vj: (0, 0)),     # embedding table (resident)
            pl.BlockSpec((Ep, tv), lambda i, vj: (0, vj)),   # W vocab tile
            pl.BlockSpec((1, tv), lambda i, vj: (0, vj)),    # bias vocab tile
        ],
        out_specs=pl.BlockSpec((tb, V), lambda i, vj: (i, 0)),   # resident across vj
        scratch_shapes=[pltpu.VMEM((tb, Ep), compute_dtype)],
    )

    cost = pl.CostEstimate(
        flops=2 * b_pad * Ep * V       # main matmul
              + 2 * b_pad * V * Ep,    # one-hot gather matmul (once per row tile)
        transcendentals=b_pad * V,
        bytes_accessed=(V * Ep + Ep * V) * esize + 4 * V + 4 * b_pad
                       + 4 * b_pad * V)

    out = pl.pallas_call(
        functools.partial(_skipgram_kernel, nv, tv),
        out_shape=jax.ShapeDtypeStruct((b_pad, V), jnp.float32),
        grid_spec=grid_spec,
        compiler_params=pltpu.CompilerParams(
            dimension_semantics=("parallel", "arbitrary"),
            vmem_limit_bytes=vmem_bytes),
        cost_estimate=cost,
    )(ids, emb_tbl, w, b2d)
    return out[:B]


def skipgram_reference(x_ids, emb_tbl, w, b):
    embeds = emb_tbl[x_ids]                 # (B, E)
    logits = embeds @ w + b                 # (B, V)
    return jax.nn.log_softmax(logits, axis=1)


if __name__ == "__main__":
    vocab_size = 128
    embed_size = 32
    batch = 8

    key = jax.random.PRNGKey(0)
    k_emb, k_w, k_b, k_x = jax.random.split(key, 4)

    emb_tbl = jax.random.normal(k_emb, (vocab_size, embed_size), dtype=jnp.float32)
    # PyTorch nn.Linear weight is [vocab, embed]; store its transpose for y = x @ W + b.
    w = jax.random.normal(k_w, (embed_size, vocab_size), dtype=jnp.float32) * 0.1
    b = jax.random.normal(k_b, (vocab_size,), dtype=jnp.float32) * 0.1
    x_ids = jax.random.randint(k_x, (batch,), 0, vocab_size, dtype=jnp.int32)

    ref = skipgram_reference(x_ids, emb_tbl, w, b)

    # f32 path (single row tile, single vocab tile).
    out = jax.block_until_ready(skipgram_forward(x_ids, emb_tbl, w, b))
    assert out.shape == (batch, vocab_size)
    assert jnp.allclose(out, ref, atol=1e-5, rtol=1e-5), "f32 mismatch vs reference"

    # bf16-compute MXU path: table + W cast host-side, f32 accum + f32 softmax.
    out_bf16 = jax.block_until_ready(
        skipgram_forward(x_ids, emb_tbl, w, b, compute_dtype=jnp.bfloat16))
    assert jnp.allclose(out_bf16, ref, atol=5e-2, rtol=5e-2), "bf16 mismatch vs reference"

    # Multi-row-tile + batch-padding path (B=20 -> 2 tiles of 16 rows, 12 padded).
    x_ids2 = jax.random.randint(jax.random.PRNGKey(1), (20,), 0, vocab_size,
                                dtype=jnp.int32)
    out2 = jax.block_until_ready(skipgram_forward(x_ids2, emb_tbl, w, b))
    ref2 = skipgram_reference(x_ids2, emb_tbl, w, b)
    assert out2.shape == (20, vocab_size)
    assert jnp.allclose(out2, ref2, atol=1e-5, rtol=1e-5), "tiled-rows mismatch vs reference"

    # Vocab-tiled path (nv > 1): V=512 with 128-wide W tiles, E=96 lane-padded to 128.
    V2, E2, B2 = 512, 96, 16
    kk = jax.random.split(jax.random.PRNGKey(2), 4)
    emb2 = jax.random.normal(kk[0], (V2, E2), dtype=jnp.float32)
    w2 = jax.random.normal(kk[1], (E2, V2), dtype=jnp.float32) * 0.1
    b2 = jax.random.normal(kk[2], (V2,), dtype=jnp.float32) * 0.1
    x3 = jax.random.randint(kk[3], (B2,), 0, V2, dtype=jnp.int32)
    out3 = jax.block_until_ready(skipgram_forward(x3, emb2, w2, b2, vocab_tile=128))
    ref3 = skipgram_reference(x3, emb2, w2, b2)
    assert out3.shape == (B2, V2)
    assert jnp.allclose(out3, ref3, atol=1e-4, rtol=1e-4), "vocab-tiled mismatch vs reference"

    print("KERNEL_OK")
</pallas_src>

<mosaic_0001>
module attributes {stable_mosaic.version = 11 : i64} {
  func.func @_skipgram_kernel(%arg0: i32, %arg1: i32, %arg2: memref<8x1xi32, #tpu.memory_space<vmem>>, %arg3: memref<128x128xf32, #tpu.memory_space<vmem>>, %arg4: memref<128x128xf32, #tpu.memory_space<vmem>>, %arg5: memref<1x128xf32, #tpu.memory_space<vmem>>, %arg6: memref<8x128xf32, #tpu.memory_space<vmem>>, %arg7: memref<8x128xf32, #tpu.memory_space<vmem>>) attributes {dimension_semantics = [#tpu.dimension_semantics<parallel>, #tpu.dimension_semantics<arbitrary>], iteration_bounds = array<i64: 1, 1>, scalar_prefetch = 0 : i64, scratch_operands = 1 : i64, tpu.core_type = #tpu.core_type<tc>, window_params = [{transform_indices = @transform_0, window_bounds = array<i64: 8, 1>}, {pipeline_mode = #tpu.pipeline_mode<synchronous>, transform_indices = @transform_1, window_bounds = array<i64: 128, 128>}, {transform_indices = @transform_2, window_bounds = array<i64: 128, 128>}, {transform_indices = @transform_3, window_bounds = array<i64: 1, 128>}, {transform_indices = @transform_4, window_bounds = array<i64: 8, 128>}]} {
    %c0_i32 = arith.constant 0 : i32
    %0 = arith.cmpi eq, %arg1, %c0_i32 : i32
    %1 = arith.extui %0 : i1 to i32
    %c0_i32_0 = arith.constant 0 : i32
    %2 = arith.cmpi ne, %1, %c0_i32_0 : i32
    scf.if %2 {
      %c0_9 = arith.constant 0 : index
      %c0_10 = arith.constant 0 : index
      %16 = vector.load %arg2[%c0_9, %c0_10] : memref<8x1xi32, #tpu.memory_space<vmem>>, vector<8x1xi32>
      %17 = tpu.iota {dimensions = array<i32: 1>} : vector<8x128xi32>
      %18 = vector.broadcast %16 : vector<8x1xi32> to vector<8x128xi32>
      %19 = arith.cmpi eq, %18, %17 : vector<8x128xi32>
      %20 = arith.extui %19 : vector<8x128xi1> to vector<8x128xi32>
      %21 = arith.sitofp %20 : vector<8x128xi32> to vector<8x128xf32>
      %c0_11 = arith.constant 0 : index
      %c0_12 = arith.constant 0 : index
      %22 = vector.load %arg3[%c0_11, %c0_12] : memref<128x128xf32, #tpu.memory_space<vmem>>, vector<128x128xf32>
      %cst_13 = arith.constant dense<0.000000e+00> : vector<8x128xf32>
      %23 = tpu.matmul %21, %22, %cst_13 {dimension_numbers = #tpu.dot_dimension_numbers<[1], [0], [0], [1], [0, 0, 1, 1], [], []>} : vector<8x128xf32>, vector<128x128xf32>, vector<8x128xf32> -> vector<8x128xf32>
      %c0_14 = arith.constant 0 : index
      %c0_15 = arith.constant 0 : index
      %24 = vector.load %arg7[%c0_14, %c0_15] : memref<8x128xf32, #tpu.memory_space<vmem>>, vector<8x128xf32>
      tpu.vector_store %arg7[%c0_14, %c0_15], %23 {strides = array<i32>} : memref<8x128xf32, #tpu.memory_space<vmem>>, vector<8x128xf32>,
    } else {
    }
    %c0 = arith.constant 0 : index
    %c0_1 = arith.constant 0 : index
    %3 = vector.load %arg7[%c0, %c0_1] : memref<8x128xf32, #tpu.memory_space<vmem>>, vector<8x128xf32>
    %c0_2 = arith.constant 0 : index
    %c0_3 = arith.constant 0 : index
    %4 = vector.load %arg4[%c0_2, %c0_3] : memref<128x128xf32, #tpu.memory_space<vmem>>, vector<128x128xf32>
    %cst = arith.constant dense<0.000000e+00> : vector<8x128xf32>
    %5 = tpu.matmul %3, %4, %cst {dimension_numbers = #tpu.dot_dimension_numbers<[1], [0], [0], [1], [0, 0, 1, 1], [], []>} : vector<8x128xf32>, vector<128x128xf32>, vector<8x128xf32> -> vector<8x128xf32>
    %c0_4 = arith.constant 0 : index
    %c0_5 = arith.constant 0 : index
    %6 = vector.load %arg5[%c0_4, %c0_5] : memref<1x128xf32, #tpu.memory_space<vmem>>, vector<1x128xf32>
    %7 = vector.broadcast %6 : vector<1x128xf32> to vector<8x128xf32>
    %8 = arith.addf %5, %7 : vector<8x128xf32>
    %c128_i32 = arith.constant 128 : i32
    %9 = arith.muli %arg1, %c128_i32 : i32
    %10 = tpu.assume_multiple %9, 128 : i32
    %c0_6 = arith.constant 0 : index
    %11 = arith.index_cast %10 : i32 to index
    %12 = vector.load %arg6[%c0_6, %11] : memref<8x128xf32, #tpu.memory_space<vmem>>, vector<8x128xf32>
    tpu.vector_store %arg6[%c0_6, %11], %8 {strides = array<i32>} : memref<8x128xf32, #tpu.memory_space<vmem>>, vector<8x128xf32>,
    %c0_i32_7 = arith.constant 0 : i32
    %13 = arith.cmpi eq, %arg1, %c0_i32_7 : i32
    %14 = arith.extui %13 : i1 to i32
    %c0_i32_8 = arith.constant 0 : i32
    %15 = arith.cmpi ne, %14, %c0_i32_8 : i32
    scf.if %15 {
      %c0_9 = arith.constant 0 : index
      %c0_10 = arith.constant 0 : index
      %16 = vector.load %arg6[%c0_9, %c0_10] : memref<8x128xf32, #tpu.memory_space<vmem>>, vector<8x128xf32>
      %cst_11 = arith.constant dense<0xFF800000> : vector<8xf32>
      %17 = vector.multi_reduction <maximumf>, %16, %cst_11 [1] : vector<8x128xf32> to vector<8xf32>
      %18 = vector.shape_cast %17 : vector<8xf32> to vector<8x1xf32>
      %19 = vector.broadcast %18 : vector<8x1xf32> to vector<8x128xf32>
      %20 = arith.subf %16, %19 : vector<8x128xf32>
      %21 = math.exp %20 : vector<8x128xf32>
      %cst_12 = arith.constant dense<0.000000e+00> : vector<8xf32>
      %22 = vector.multi_reduction <add>, %21, %cst_12 [1] : vector<8x128xf32> to vector<8xf32>
      %23 = vector.shape_cast %22 : vector<8xf32> to vector<8x1xf32>
      %24 = math.log %23 : vector<8x1xf32>
      %25 = arith.addf %18, %24 : vector<8x1xf32>
      %26 = vector.broadcast %25 : vector<8x1xf32> to vector<8x128xf32>
      %27 = arith.subf %16, %26 : vector<8x128xf32>
      %c0_13 = arith.constant 0 : index
      %c0_14 = arith.constant 0 : index
      %28 = vector.load %arg6[%c0_13, %c0_14] : memref<8x128xf32, #tpu.memory_space<vmem>>, vector<8x128xf32>
      tpu.vector_store %arg6[%c0_13, %c0_14], %27 {strides = array<i32>} : memref<8x128xf32, #tpu.memory_space<vmem>>, vector<8x128xf32>,
    } else {
    }
    return
  }
  func.func @transform_0(%arg0: i32, %arg1: i32) -> (i32, i32) {
    %c0_i32 = arith.constant 0 : i32
    %c0_i32_0 = arith.constant 0 : i32
    return %arg0, %c0_i32 : i32, i32
  }
  func.func @transform_1(%arg0: i32, %arg1: i32) -> (i32, i32) {
    %c0_i32 = arith.constant 0 : i32
    %c0_i32_0 = arith.constant 0 : i32
    %c0_i32_1 = arith.constant 0 : i32
    return %c0_i32, %c0_i32_0 : i32, i32
  }
  func.func @transform_2(%arg0: i32, %arg1: i32) -> (i32, i32) {
    %c0_i32 = arith.constant 0 : i32
    %c0_i32_0 = arith.constant 0 : i32
    return %c0_i32, %arg1 : i32, i32
  }
  func.func @transform_3(%arg0: i32, %arg1: i32) -> (i32, i32) {
    %c0_i32 = arith.constant 0 : i32
    %c0_i32_0 = arith.constant 0 : i32
    return %c0_i32, %arg1 : i32, i32
  }
  func.func @transform_4(%arg0: i32, %arg1: i32) -> (i32, i32) {
    %c0_i32 = arith.constant 0 : i32
    %c0_i32_0 = arith.constant 0 : i32
    return %arg0, %c0_i32 : i32, i32
  }
}

</mosaic_0001>

<bundles_post_ra>
// kernel: tpu_custom_call.1
= control target key start
LH: loop header
LB: loop body
LE: loop exit
PB: predicated region body
PF: predicated region fallthrough
CT: control target
= control target key end

     0   :  { %9 = vsyncpa [#allocation4], 0  ;;  %s613_s0 = inlined_call_operand.vmem [shape: s32[8,1], index: 0, kind: input, shape index: {}]   ;;  %s614_s1 = inlined_call_operand.hbm [shape: f32[128,128], index: 1, kind: input, shape index: {}]   ;;  %s615_s2 = inlined_call_operand.hbm [shape: f32[128,128], index: 2, kind: input, shape index: {}]   ;;  %s616_s3 = inlined_call_operand.vmem [shape: f32[1,128], index: 3, kind: input, shape index: {}]   ;;  %s617_s4 = inlined_call_operand.hbm [shape: f32[8,128], index: 4, kind: output, shape index: {}]  }
   0x1   :  { %10 = vsyncpa [#allocation7], 0 }
   0x2   :  { %11 = vsyncpa [#allocation5], 0  ;;  %s520_s15 = smov [#allocation3]   ;;  %s448_s19 = scalar_lea.hbm %s614_s1, 2048 }
   0x3   :  { %s19_s16 = sshll.u32 %s520_s15, 4  ;;  %p449_p0 = scmp.ne.s32.totalorder %s614_s1, %s448_s19  ;;  %s20_s16 = int_to_ptr.vmem [resolvable:$true] %s19_s16 }
   0x4   :  { %p452_p1 = scmp.lt.u32.totalorder %s448_s19, %s614_s1 }
   0x6   :  { %p454_p2 = pnand %p452_p1, %p449_p0 }
   0x8   :  { %457 = shalt.err (!%p454_p2)
}
   0x9   :  { %s458_s24 = scalar_lea.vmem %s20_s16, 2048  ;;  %p463_p4 = scmp.lt.s32.totalorder %s20_s16, %s20_s16 }
   0xa   :  { %p459_p3 = scmp.ne.s32.totalorder %s20_s16, %s458_s24  ;;  %p464_p5 = scmp.lt.s32.totalorder %s458_s24, %s458_s24 }
   0xc   :  { %p465_p6 = por %p464_p5, %p463_p4 }
   0xe   :  { %p466_p7 = pnand %p465_p6, %p459_p3 }
  0x10   :  { %469 = shalt.err (!%p466_p7)
}
  0x11   :  { %s521_s25 = smov 128   ;;  %s522_s26 = smov 8  }
  0x12   :  { %25 = dma.hbm_to_vmem [thread:$0]  %s614_s1, 2048, %s20_s16, [#allocation4], %s521_s25, %s521_s25, %s522_s26  }
  0x13   :  { %s523_s29 = smov [#allocation6]   ;;  %s470_s7 = scalar_lea.hbm %s615_s2, 2048 }
  0x14   :  { %s31_s30 = sshll.u32 %s523_s29, 4  ;;  %p471_p8 = scmp.ne.s32.totalorder %s615_s2, %s470_s7  ;;  %s32_s30 = int_to_ptr.vmem [resolvable:$true] %s31_s30 }
  0x15   :  { %p474_p9 = scmp.lt.u32.totalorder %s470_s7, %s615_s2 }
  0x17   :  { %p476_p10 = pnand %p474_p9, %p471_p8 }
  0x19   :  { %479 = shalt.err (!%p476_p10)
}
  0x1a   :  { %s480_s12 = scalar_lea.vmem %s32_s30, 2048  ;;  %p485_p12 = scmp.lt.s32.totalorder %s32_s30, %s32_s30 }
  0x1b   :  { %p481_p11 = scmp.ne.s32.totalorder %s32_s30, %s480_s12  ;;  %p486_p13 = scmp.lt.s32.totalorder %s480_s12, %s480_s12 }
  0x1d   :  { %p487_p0 = por %p486_p13, %p485_p12 }
  0x1f   :  { %p488_p1 = pnand %p487_p0, %p481_p11 }
  0x21   :  { %491 = shalt.err (!%p488_p1)
}
  0x22   :  { %37 = dma.hbm_to_vmem [thread:$0]  %s615_s2, 2048, %s32_s30, [#allocation7], %s521_s25, %s521_s25, %s522_s26  }
  0x23   :  { %514 = dma.done.wait [#allocation4], 2048  }
  0x24   :  { %515 = vsyncadd [#allocation4], 4294965248 }
  0x25   :  { %516 = dma.done.wait [#allocation7], 2048  }
  0x26   :  { %517 = vsyncadd [#allocation7], 4294965248  ;;  %v524_v0 = vmov 0   ;;  %v525_v1 = vmov 0.0|0.0   ;;  %v50_v2 = vld [vmem:[%s613_s0] sm:$0xff]  ;;  %v59_v3 = vld [vmem:[#allocation3] sm:$0xff]  ;;  %v51_v52 = vlaneseq }
  0x27   :  { %443 = vset.pattern.permute.xlu0 %v524_v0  ;;  %385 = vmatprep.subr.bf16.mxu0 %v525_v1  ;;  %v60_v4 = vld [vmem:[#allocation3 + $0x8] sm:$0xff]  ;;  %v61_v6 = vld [vmem:[#allocation3 + $0x10] sm:$0xff]  ;;  %v62_v7 = vld [vmem:[#allocation3 + $0x18] sm:$0xff]  ;;  %vm526_vm0 = vmmov 0   ;;  %v527_v8 = vmov 0.0   ;;  %v528_v55 = vmov 1.0  }
  0x28   :  { %409 = vmatprep.subr.bf16.mxu1 %v525_v1  ;;  %54 = vperm.xlu0 %443, %v50_v2   ;;  %v386_v5 = vpack.c.bf16 %v60_v4, %v59_v3  ;;  %v389_v9 = vpack.c.bf16 %v62_v7, %v61_v6  ;;  %v63_v10 = vld [vmem:[#allocation3 + $0x20] sm:$0xff]  ;;  %v64_v11 = vld [vmem:[#allocation3 + $0x28] sm:$0xff]  ;;  %v149_v14 = vld [vmem:[#allocation6 + $0x10] sm:$0xff]  ;;  %v52_v53 = vand.u32 127, %v51_v52  ;;  %s529_s16 = smov [#allocation8]  }
  0x29   :  { %347 = vmatprep.mubr.msk.f32.mxu0 %vm526_vm0, %v527_v8  ;;  %382 = vmatprep.mubr.msk.f32.mxu1 %vm526_vm0, %v527_v8  ;;  %v147_v12 = vld [vmem:[#allocation6] sm:$0xff]  ;;  %v148_v13 = vld [vmem:[#allocation6 + $0x8] sm:$0xff]  ;;  %v150_v15 = vld [vmem:[#allocation6 + $0x18] sm:$0xff]  ;;  %v392_v16 = vpack.c.bf16 %v64_v11, %v63_v10  ;;  %s267_s17 = sshll.u32 %s529_s16, 4  ;;  %s268_s17 = int_to_ptr.vmem [resolvable:$true] %s267_s17 }
  0x2a   :  { %387 = vmatpush3.bf16.msra.mxu0 %v386_v5  ;;  %v410_v17 = vpack.c.bf16 %v148_v13, %v147_v12  ;;  %v65_v18 = vld [vmem:[#allocation3 + $0x30] sm:$0xff]  ;;  %v66_v19 = vld [vmem:[#allocation3 + $0x38] sm:$0xff]  ;;  %v413_v20 = vpack.c.bf16 %v150_v15, %v149_v14  ;;  %v151_v21 = vld [vmem:[#allocation6 + $0x20] sm:$0xff]  ;;  %p497_p3 = scmp.lt.s32.totalorder %s268_s17, %s268_s17 }
  0x2b   :  { %388 = vmatprep.subr.bf16.mxu0 %v525_v1  ;;  %v152_v22 = vld [vmem:[#allocation6 + $0x28] sm:$0xff]  ;;  %v395_v23 = vpack.c.bf16 %v66_v19, %v65_v18  ;;  %v67_v24 = vld [vmem:[#allocation3 + $0x40] sm:$0xff]  ;;  %v153_v27 = vld [vmem:[#allocation6 + $0x30] sm:$0xff] }
  0x2c   :  { %411 = vmatpush3.bf16.msra.mxu1 %v410_v17  ;;  %v68_v25 = vld [vmem:[#allocation3 + $0x48] sm:$0xff]  ;;  %v416_v26 = vpack.c.bf16 %v152_v22, %v151_v21  ;;  %v154_v28 = vld [vmem:[#allocation6 + $0x38] sm:$0xff]  ;;  %v69_v30 = vld [vmem:[#allocation3 + $0x50] sm:$0xff] }
  0x2d   :  { %412 = vmatprep.subr.bf16.mxu1 %v525_v1  ;;  %v398_v29 = vpack.c.bf16 %v68_v25, %v67_v24  ;;  %v70_v31 = vld [vmem:[#allocation3 + $0x58] sm:$0xff]  ;;  %v419_v32 = vpack.c.bf16 %v154_v28, %v153_v27  ;;  %v155_v33 = vld [vmem:[#allocation6 + $0x40] sm:$0xff]  ;;  %v156_v34 = vld [vmem:[#allocation6 + $0x48] sm:$0xff] }
  0x2e   :  { %390 = vmatpush3.bf16.msra.mxu0 %v389_v9  ;;  %v401_v35 = vpack.c.bf16 %v70_v31, %v69_v30  ;;  %v71_v36 = vld [vmem:[#allocation3 + $0x60] sm:$0xff]  ;;  %v72_v37 = vld [vmem:[#allocation3 + $0x68] sm:$0xff]  ;;  %v422_v38 = vpack.c.bf16 %v156_v34, %v155_v33  ;;  %v157_v39 = vld [vmem:[#allocation6 + $0x50] sm:$0xff] }
  0x2f   :  { %391 = vmatprep.subr.bf16.mxu0 %v525_v1  ;;  %v158_v40 = vld [vmem:[#allocation6 + $0x58] sm:$0xff]  ;;  %v404_v41 = vpack.c.bf16 %v72_v37, %v71_v36  ;;  %v73_v42 = vld [vmem:[#allocation3 + $0x70] sm:$0xff]  ;;  %v159_v45 = vld [vmem:[#allocation6 + $0x60] sm:$0xff] }
  0x30   :  { %414 = vmatpush3.bf16.msra.mxu1 %v413_v20  ;;  %v74_v43 = vld [vmem:[#allocation3 + $0x78] sm:$0xff]  ;;  %v425_v44 = vpack.c.bf16 %v158_v40, %v157_v39  ;;  %v160_v46 = vld [vmem:[#allocation6 + $0x68] sm:$0xff]  ;;  %v161_v49 = vld [vmem:[#allocation6 + $0x70] sm:$0xff] }
  0x31   :  { %415 = vmatprep.subr.bf16.mxu1 %v525_v1  ;;  %v407_v47 = vpack.c.bf16 %v74_v43, %v73_v42  ;;  %v428_v48 = vpack.c.bf16 %v160_v46, %v159_v45  ;;  %v162_v50 = vld [vmem:[#allocation6 + $0x78] sm:$0xff]  ;;  %v280_v58 = vld [vmem:[%s616_s3] ss:$0 sm:$0xff]  ;;  %s492_s3 = scalar_lea.vmem %s268_s17, 128 }
  0x32   :  { %393 = vmatpush3.bf16.msra.mxu0 %v392_v16  ;;  %v431_v51 = vpack.c.bf16 %v162_v50, %v161_v49  ;;  %p493_p2 = scmp.ne.s32.totalorder %s268_s17, %s492_s3  ;;  %p498_p4 = scmp.lt.s32.totalorder %s492_s3, %s492_s3 }
  0x33   :  { %394 = vmatprep.subr.bf16.mxu0 %v525_v1 }
  0x34   :  { %417 = vmatpush3.bf16.msra.mxu1 %v416_v26  ;;  %p499_p5 = por %p498_p4, %p497_p3 }
  0x35   :  { %418 = vmatprep.subr.bf16.mxu1 %v525_v1 }
  0x36   :  { %396 = vmatpush3.bf16.msra.mxu0 %v395_v23  ;;  %p500_p6 = pnand %p499_p5, %p493_p2 }
  0x37   :  { %397 = vmatprep.subr.bf16.mxu0 %v525_v1 }
  0x38   :  { %420 = vmatpush3.bf16.msra.mxu1 %v419_v32 }
  0x39   :  { %421 = vmatprep.subr.bf16.mxu1 %v525_v1 }
  0x3a   :  { %399 = vmatpush3.bf16.msra.mxu0 %v398_v29 }
  0x3b   :  { %400 = vmatprep.subr.bf16.mxu0 %v525_v1 }
  0x3c   :  { %423 = vmatpush3.bf16.msra.mxu1 %v422_v38 }
  0x3d   :  { %424 = vmatprep.subr.bf16.mxu1 %v525_v1 }
  0x3e   :  { %402 = vmatpush3.bf16.msra.mxu0 %v401_v35 }
  0x3f   :  { %403 = vmatprep.subr.bf16.mxu0 %v525_v1 }
  0x40   :  { %426 = vmatpush3.bf16.msra.mxu1 %v425_v44 }
  0x41   :  { %427 = vmatprep.subr.bf16.mxu1 %v525_v1 }
  0x42   :  { %405 = vmatpush3.bf16.msra.mxu0 %v404_v41 }
  0x43   :  { %406 = vmatprep.subr.bf16.mxu0 %v525_v1 }
  0x44   :  { %429 = vmatpush3.bf16.msra.mxu1 %v428_v48 }
  0x45   :  { %430 = vmatprep.subr.bf16.mxu1 %v525_v1 }
  0x46   :  { %408 = vmatpush3.bf16.msra.mxu0 %v407_v47 }
  0x48   :  { %432 = vmatpush3.bf16.msra.mxu1 %v431_v51 }
  0xa7   :  { %v55_v54 = vpop.permute.xlu0 %54 }
  0xa8   :  { %vm56_vm1 = vcmp.eq.s32.totalorder %v55_v54, %v52_v53 }
  0xa9   :  { %348 = vmatmul.mubr.msk.f32.vlgmr.msra.gmra.mrb[0].mxu0 %vm56_vm1, %v528_v55 }
 0x17c   :  { %v141_v56 = vpop.f32.mrb[0].mxu0 }
 0x17d   :  { %v349_v57 = vpop.f32.mrb[1].mxu0  ;;  %383 = vmatmul.mubr.f32.vlgmr.msra.gmra.mrb[0].mxu1 %v141_v56 }
 0x250   :  { %v236_v59 = vpop.f32.mrb[0].mxu1 }
 0x251   :  { %v237_v60 = vadd.f32 %v280_v58, %v236_v59  ;;  %v384_v61 = vpop.f32.mrb[1].mxu1 }
 0x253   :  { %249 = vmax.xlane.f32.xlu0 %v237_v60 }
 0x2e0   :  { %v250_v62 = vpop.xlane.xlu0 %249 }
 0x2e1   :  { %v251_v63 = vsub.f32 %v237_v60, %v250_v62 }
 0x2e3   :  { %v252_v0 = vmul.f32 1.442695, %v251_v63 }
 0x2e5   :  { %444 = vpow2.f32 %v252_v0 }
 0x2ef   :  { %v445_v1 = vpop.eup %444 }
 0x2f0   :  { %254 = vadd.xlane.f32.xlu1 %v445_v1 }
 0x37d   :  { %v255_v2 = vpop.xlane.xlu1 %254 }
 0x37e   :  { %446 = vlog2.f32 %v255_v2 }
 0x388   :  { %v447_v3 = vpop.eup %446 }
 0x389   :  { %v257_v4 = vmul.f32 0.6931472, %v447_v3 }
 0x38b   :  { %v258_v5 = vadd.f32 %v257_v4, %v250_v62 }
 0x38d   :  { %v259_v6 = vsub.f32 %v237_v60, %v258_v5 }
 0x38f   :  { %260 = vst [vmem:[#allocation8] sm:$0xff] %v259_v6 }
 0x390   :  { %503 = shalt.err (!%p500_p6)
}
 0x391   :  { %s504_s20 = scalar_lea.hbm %s617_s4, 128 }
 0x392   :  { %p505_p7 = scmp.ne.s32.totalorder %s617_s4, %s504_s20  ;;  %p508_p8 = scmp.lt.u32.totalorder %s504_s20, %s617_s4 }
 0x394   :  { %p510_p9 = pnand %p508_p8, %p505_p7 }
 0x396   :  { %513 = shalt.err (!%p510_p9)
}
 0x397   :  { %270 = dma.vmem_to_hbm [thread:$0]  %s268_s17, 128, %s617_s4, [#allocation5]  }
 0x398   :  { %518 = dma.done.wait [#allocation5], 128  }
 0x399   :  { %519 = vsyncadd [#allocation5], 4294967168 }
 0x39a   :  { %274 = vsyncpa [#allocation4], 1 }
 0x39b   :  { %275 = vsyncpa [#allocation7], 1 }
 0x39c   :  { %276 = vsyncpa [#allocation5], 1 }

</bundles_post_ra>
